<compile_context>
chip_gen: v6e
topology: v6e:2x2x1
jax: 0.10.0
libtpu: 0.0.40
codegen_flags: <defaults>
</compile_context>

<pallas_src>
import jax
import jax.numpy as jnp
from jax.experimental import pallas as pl
from jax.experimental.pallas import tpu as pltpu


def _lama_pooling_kernel(x_ref, out_ref):
    # x_ref  : (TB, T, F) VMEM block (TB batch elements)
    # out_ref: (TB, 4*F)  lane-dense output slab: [last | avg | max | softmax]
    x = x_ref[...]                                   # [TB, T, F]
    T = x.shape[1]

    last = x[:, T - 1, :]                            # [TB, F]

    # Sum over the full history, then subtract the last step instead of
    # slicing x[:, :T-1, :] (which is sublane-misaligned and would copy).
    full_sum = jnp.sum(x, axis=1)                    # [TB, F]
    hist_sum = full_sum - last                       # sum over t of x[:, :-1, :]
    avg = hist_sum * (1.0 / (T - 1))                 # mean over t of x[:, :-1, :]

    # Masked max over the history (exclude the last time step).
    t_idx = jax.lax.broadcasted_iota(jnp.int32, x.shape, 1)
    mx = jnp.max(jnp.where(t_idx < T - 1, x, -jnp.inf), axis=1)   # [TB, F]

    # 'softmax' pooling: softmax over a singleton dim == 1 -> plain sum.
    attn_out = hist_sum                              # [TB, F]

    # Single lane-dense store of the whole (TB, 4*F) result.
    out_ref[...] = jnp.concatenate([last, avg, mx, attn_out], axis=-1)


def _pick_block_b(B, T, F, itemsize):
    """Choose how many batch elements to process per grid step."""
    # ~2 MiB per block (input rows + output rows); double-buffering by the
    # Pallas pipeline keeps the working set well under the 32 MiB VMEM limit
    # we request (and under v7x's smaller physical VMEM).
    target_bytes = 2 << 20
    per_b = (T * F + 4 * F) * itemsize
    tb = max(1, target_bytes // per_b)
    if tb >= B:
        return B
    # Output block's sublane dim must be a multiple of 8 (or equal B).
    return max(8, (tb // 8) * 8)


def lama_pooling(features, conv_w=None, conv_b=None, *, block_b=None):
    """features: [B, T, F] float32 -> [B, 4*F].

    conv_w / conv_b (the TemporalAttentionPooling Conv1d params) are accepted
    for API compatibility but unused: softmax over the singleton channel dim
    makes the attention weights identically 1 for finite inputs.
    Requires T >= 2 (same as the PyTorch module's avg/max over x[:, :-1, :]).
    """
    del conv_w, conv_b
    B, T, F = features.shape
    if block_b is None:
        block_b = _pick_block_b(B, T, F, features.dtype.itemsize)
    grid = (pl.cdiv(B, block_b),)

    out = pl.pallas_call(
        _lama_pooling_kernel,
        out_shape=jax.ShapeDtypeStruct((B, 4 * F), features.dtype),
        grid_spec=pltpu.PrefetchScalarGridSpec(
            num_scalar_prefetch=0,
            grid=grid,
            in_specs=[pl.BlockSpec((block_b, T, F), lambda b: (b, 0, 0))],
            out_specs=pl.BlockSpec((block_b, 4 * F), lambda b: (b, 0)),
        ),
        compiler_params=pltpu.CompilerParams(
            dimension_semantics=("parallel",),
            vmem_limit_bytes=32 << 20,
        ),
    )(features)
    return out


def lama_pooling_ref(features, conv_w, conv_b):
    """Pure-JAX reference mirroring the PyTorch module literally."""
    x = features
    last = x[:, -1:, :]
    xh = x[:, :-1, :]
    avg = jnp.mean(xh, axis=1, keepdims=True)
    mx = jnp.max(xh, axis=1, keepdims=True)
    # TemporalAttentionPooling: Conv1d(F->1, k=1) logits, softmax over the
    # singleton channel dim (== 1), then sum over time.
    logits = jnp.einsum("btf,f->bt", xh, conv_w[0]) + conv_b[0, 0]   # [B, T-1]
    attn = jax.nn.softmax(logits[:, None, :], axis=1)                # [B,1,T-1] == 1
    attn_out = jnp.sum(attn.transpose(0, 2, 1) * xh, axis=1, keepdims=True)
    out = jnp.concatenate([last, avg, mx, attn_out], axis=1)         # [B, 4, F]
    return out.reshape(x.shape[0], -1)


if __name__ == "__main__":
    B, T, F = 2, 8, 32
    key = jax.random.PRNGKey(0)
    kx, kw, kb = jax.random.split(key, 3)

    features = jax.random.normal(kx, (B, T, F), dtype=jnp.float32)
    # Conv1d(F -> 1, kernel_size=1) params (unused by the kernel; only needed
    # by the literal reference).
    conv_w = (jax.random.uniform(kw, (1, F), dtype=jnp.float32) - 0.5) * 0.1
    conv_b = (jax.random.uniform(kb, (1, 1), dtype=jnp.float32) - 0.5) * 0.1

    out = lama_pooling(features, conv_w, conv_b)
    out = jax.block_until_ready(out)

    ref = lama_pooling_ref(features, conv_w, conv_b)
    assert out.shape == (B, 4 * F), out.shape
    assert jnp.allclose(out, ref, atol=1e-5, rtol=1e-5), float(
        jnp.max(jnp.abs(out - ref))
    )
    print("KERNEL_OK")
</pallas_src>

<mosaic_0001>
module attributes {stable_mosaic.version = 11 : i64} {
  func.func @_lama_pooling_kernel(%arg0: i32, %arg1: memref<2x8x32xf32, #tpu.memory_space<vmem>>, %arg2: memref<2x128xf32, #tpu.memory_space<vmem>>) attributes {dimension_semantics = [#tpu.dimension_semantics<parallel>], iteration_bounds = array<i64: 1>, scalar_prefetch = 0 : i64, scratch_operands = 0 : i64, tpu.core_type = #tpu.core_type<tc>, window_params = [{transform_indices = @transform_0, window_bounds = array<i64: 2, 8, 32>}, {transform_indices = @transform_1, window_bounds = array<i64: 2, 128>}]} {
    %c0 = arith.constant 0 : index
    %c0_0 = arith.constant 0 : index
    %c0_1 = arith.constant 0 : index
    %0 = vector.load %arg1[%c0, %c0_0, %c0_1] : memref<2x8x32xf32, #tpu.memory_space<vmem>>, vector<2x8x32xf32>
    %1 = vector.extract_strided_slice %0 {offsets = [0, 7, 0], sizes = [2, 1, 32], strides = [1, 1, 1]} : vector<2x8x32xf32> to vector<2x1x32xf32>
    %2 = vector.shape_cast %1 : vector<2x1x32xf32> to vector<2x32xf32>
    %cst = arith.constant dense<0.000000e+00> : vector<2x32xf32>
    %3 = vector.multi_reduction <add>, %0, %cst [1] : vector<2x8x32xf32> to vector<2x32xf32>
    %4 = arith.subf %3, %2 : vector<2x32xf32>
    %cst_2 = arith.constant 0.142857149 : f32
    %5 = vector.broadcast %cst_2 : f32 to vector<2x32xf32>
    %6 = arith.mulf %4, %5 : vector<2x32xf32>
    %7 = tpu.iota {dimensions = array<i32: 1>} : vector<2x8x32xi32>
    %c7_i32 = arith.constant 7 : i32
    %8 = vector.broadcast %c7_i32 : i32 to vector<2x8x32xi32>
    %9 = arith.cmpi slt, %7, %8 : vector<2x8x32xi32>
    %cst_3 = arith.constant 0xFF800000 : f32
    %10 = vector.broadcast %cst_3 : f32 to vector<2x8x32xf32>
    %11 = arith.select %9, %0, %10 : vector<2x8x32xi1>, vector<2x8x32xf32>
    %cst_4 = arith.constant dense<0xFF800000> : vector<2x32xf32>
    %12 = vector.multi_reduction <maximumf>, %11, %cst_4 [1] : vector<2x8x32xf32> to vector<2x32xf32>
    %13 = tpu.concatenate %2, %6, %12, %4 in 1 : vector<2x32xf32>, vector<2x32xf32>, vector<2x32xf32>, vector<2x32xf32> -> vector<2x128xf32>
    %c0_5 = arith.constant 0 : index
    %c0_6 = arith.constant 0 : index
    %14 = vector.load %arg2[%c0_5, %c0_6] : memref<2x128xf32, #tpu.memory_space<vmem>>, vector<2x128xf32>
    tpu.vector_store %arg2[%c0_5, %c0_6], %13 {strides = array<i32>} : memref<2x128xf32, #tpu.memory_space<vmem>>, vector<2x128xf32>,
    return
  }
  func.func @transform_0(%arg0: i32) -> (i32, i32, i32) {
    %c0_i32 = arith.constant 0 : i32
    %c0_i32_0 = arith.constant 0 : i32
    %c0_i32_1 = arith.constant 0 : i32
    return %arg0, %c0_i32, %c0_i32_0 : i32, i32, i32
  }
  func.func @transform_1(%arg0: i32) -> (i32, i32) {
    %c0_i32 = arith.constant 0 : i32
    %c0_i32_0 = arith.constant 0 : i32
    return %arg0, %c0_i32 : i32, i32
  }
}

</mosaic_0001>

<bundles_post_ra>
// kernel: tpu_custom_call.1
= control target key start
LH: loop header
LB: loop body
LE: loop exit
PB: predicated region body
PF: predicated region fallthrough
CT: control target
= control target key end

     0   :  { %6 = vsyncpa [#allocation3], 0  ;;  %s199_s0 = inlined_call_operand.hbm [shape: f32[2,8,32], index: 0, kind: input, shape index: {}]   ;;  %s200_s1 = inlined_call_operand.hbm [shape: f32[2,128], index: 1, kind: output, shape index: {}]  }
   0x1   :  { %7 = vsyncpa [#allocation4], 0  ;;  %s170_s6 = smov [#allocation2]  }
   0x2   :  { %s13_s7 = sshll.u32 %s170_s6, 4  ;;  %s14_s7 = int_to_ptr.vmem [resolvable:$true] %s13_s7 }
   0x3   :  { %s134_s8 = scalar_lea.vmem %s14_s7, 256  ;;  %p139_p1 = scmp.lt.s32.totalorder %s14_s7, %s14_s7 }
   0x4   :  { %p135_p0 = scmp.ne.s32.totalorder %s14_s7, %s134_s8  ;;  %p140_p2 = scmp.lt.s32.totalorder %s134_s8, %s134_s8 }
   0x6   :  { %p141_p3 = por %p140_p2, %p139_p1 }
   0x8   :  { %p142_p4 = pnand %p141_p3, %p135_p0 }
   0xa   :  { %145 = shalt.err (!%p142_p4)
}
   0xb   :  { %s171_s9 = smov 128   ;;  %s172_s10 = smov 8  }
   0xc   :  { %19 = dma.hbm_to_vmem [thread:$0]  %s199_s0, 256, %s14_s7, [#allocation3], %s171_s9, %s171_s9, %s172_s10  }
   0xd   :  { %166 = dma.done.wait [#allocation3], 256  }
   0xe   :  { %167 = vsyncadd [#allocation3], 4294967040  ;;  %v44_v0 = vlaneseq  ;;  %vm25_vm0 = vcmask 261120   ;;  %v23_v2 = vld [vmem:[#allocation2] sm:$0xff]  ;;  %v24_v3 = vld [vmem:[#allocation2 + $0x8] sm:$0xff]  ;;  %s173_s0 = smov 64  }
   0xf   :  { %v26_v6 = vsel %vm25_vm0, %v23_v2, 0.0  ;;  %v33_v7 = vsel %vm25_vm0, %v24_v3, 0.0  ;;  %s174_s13 = smov 32   ;;  %s175_s14 = smov 96   ;;  %v65_v43 = vrot.slane %v24_v3, 7  ;;  %vm99_vm2 = vcmask 785408  }
  0x10   :  { %v45_v1 = vshrl.u32 %v44_v0, 7  ;;  %v27_v9 = vrot.slane %v26_v6, 4  ;;  %v34_v11 = vrot.slane %v33_v7, 4  ;;  %vm96_vm3 = vcmask 523264   ;;  %s176_s15 = smov [#allocation5]  }
  0x11   :  { %s110_s16 = sshll.u32 %s176_s15, 4  ;;  %s111_s16 = int_to_ptr.vmem [resolvable:$true] %s110_s16 }
  0x12   :  { %vm46_vm1 = vcmp.lt.s32.totalorder %v45_v1, 7  ;;  %v28_v14 = vadd.f32 %v27_v9, %v26_v6  ;;  %v35_v15 = vadd.f32 %v34_v11, %v33_v7  ;;  %s146_s17 = scalar_lea.vmem %s111_s16, 32  ;;  %p151_p6 = scmp.lt.s32.totalorder %s111_s16, %s111_s16 }
  0x13   :  { %v47_v4 = vsel %vm46_vm1, %v23_v2, -inf  ;;  %v48_v5 = vsel %vm46_vm1, %v24_v3, -inf  ;;  %p147_p5 = scmp.ne.s32.totalorder %s111_s16, %s146_s17  ;;  %p152_p7 = scmp.lt.s32.totalorder %s146_s17, %s146_s17 }
  0x14   :  { %v49_v8 = vsel %vm25_vm0, %v47_v4, -inf  ;;  %v56_v10 = vsel %vm25_vm0, %v48_v5, -inf  ;;  %v29_v18 = vrot.slane %v28_v14, 2  ;;  %v36_v19 = vrot.slane %v35_v15, 2 }
  0x15   :  { %v50_v12 = vrot.slane %v49_v8, 4  ;;  %v57_v13 = vrot.slane %v56_v10, 4  ;;  %p153_p8 = por %p152_p7, %p151_p6 }
  0x16   :  { %v30_v22 = vadd.f32 %v29_v18, %v28_v14  ;;  %v37_v23 = vadd.f32 %v36_v19, %v35_v15 }
  0x17   :  { %v51_v16 = vmax.f32 %v49_v8, %v50_v12  ;;  %v58_v17 = vmax.f32 %v56_v10, %v57_v13  ;;  %p154_p9 = pnand %p153_p8, %p147_p5 }
  0x18   :  { %v31_v26 = vrot.slane %v30_v22, 1  ;;  %v38_v27 = vrot.slane %v37_v23, 1 }
  0x19   :  { %v52_v20 = vrot.slane %v51_v16, 2  ;;  %v59_v21 = vrot.slane %v58_v17, 2 }
  0x1a   :  { %v32_v30 = vadd.f32 %v31_v26, %v30_v22  ;;  %v39_v31 = vadd.f32 %v38_v27, %v37_v23 }
  0x1b   :  { %v53_v24 = vmax.f32 %v51_v16, %v52_v20  ;;  %v60_v25 = vmax.f32 %v58_v17, %v59_v21 }
  0x1c   :  { %v40_v33 = vsub.f32 %v32_v30, %v23_v2  ;;  %v41_v34 = vsub.f32 %v39_v31, %v24_v3 }
  0x1d   :  { %v54_v28 = vrot.slane %v53_v24, 1  ;;  %v61_v29 = vrot.slane %v60_v25, 1 }
  0x1e   :  { %v42_v36 = vmul.f32 0.14285715, %v40_v33  ;;  %v43_v37 = vmul.f32 0.14285715, %v41_v34  ;;  %v87_v39 = vrot.slane %v41_v34, 7 }
  0x1f   :  { %v55_v32 = vmax.f32 %v53_v24, %v54_v28  ;;  %v62_v35 = vmax.f32 %v60_v25, %v61_v29 }
  0x20   :  { %71 = vrot.lane.b32.xlu0 %v42_v36, %s174_s13  ;;  %v70_v38 = vrot.slane %v43_v37, 7 }
  0x21   :  { %79 = vrot.lane.b32.xlu1 %v55_v32, %s173_s0 }
  0x24   :  { %73 = vrot.lane.b32.xlu0 %v70_v38, %s174_s13 }
  0x25   :  { %81 = vrot.lane.b32.xlu1 %v62_v35, %s173_s0 }
  0x28   :  { %88 = vrot.lane.b32.xlu0 %v40_v33, %s175_s14 }
  0x29   :  { %90 = vrot.lane.b32.xlu1 %v87_v39, %s175_s14 }
  0x92   :  { %v72_v41 = vpop.permute.xlu0 %71 }
  0x93   :  { %v80_v40 = vpop.permute.xlu1 %79  ;;  %v94_v45 = vsel %vm25_vm0, %v23_v2, %v72_v41 }
  0x94   :  { %v97_v50 = vsel %vm96_vm3, %v94_v45, %v80_v40 }
  0x96   :  { %v74_v44 = vpop.permute.xlu0 %73 }
  0x97   :  { %v82_v42 = vpop.permute.xlu1 %81  ;;  %v95_v46 = vsel %vm25_vm0, %v65_v43, %v74_v44 }
  0x98   :  { %v98_v48 = vsel %vm96_vm3, %v95_v46, %v82_v42 }
  0x9a   :  { %v89_v51 = vpop.permute.xlu0 %88 }
  0x9b   :  { %v91_v47 = vpop.permute.xlu1 %90  ;;  %v100_v52 = vsel %vm99_vm2, %v97_v50, %v89_v51 }
  0x9c   :  { %v101_v49 = vsel %vm99_vm2, %v98_v48, %v91_v47  ;;  %102 = vst [vmem:[#allocation5 - $0x7] sm:$0x80] %v100_v52 }
  0x9d   :  { %103 = vst [vmem:[#allocation5 + $0x1] sm:$0x1] %v101_v49 }
  0x9e   :  { %157 = shalt.err (!%p154_p9)
}
  0x9f   :  { %113 = dma.vmem_to_hbm [thread:$0]  %s111_s16, 32, %s200_s1, [#allocation4]  }
  0xa0   :  { %168 = dma.done.wait [#allocation4], 32  }
  0xa1   :  { %169 = vsyncadd [#allocation4], 4294967264 }
  0xa2   :  { %117 = vsyncpa [#allocation3], 1 }
  0xa3   :  { %118 = vsyncpa [#allocation4], 1 }

</bundles_post_ra>
